<compile_context>
chip_gen: v7x
topology: tpu7x:2x2x1
jax: 0.10.0
libtpu: 0.0.40
codegen_flags: <defaults>
</compile_context>

<pallas_src>
import functools

import jax
import jax.numpy as jnp
from jax.experimental import pallas as pl
from jax.experimental.pallas import tpu as pltpu


# ----------------------------- Pallas kernels -----------------------------

def convt_gemm_kernel(w_ref, p_ref, y_ref, s_ref):
    """Transposed-conv GEMM (sub-pixel/phase decomposition) + BN partial stats.

    w_ref : (4*Cout, 9*Cin)   bf16  sub-pixel weights, rows = (ph, pw, co)
    p_ref : (1, 9*Cin, TS)    bf16  patch matrix, rows = (th, tw, ci), lanes = pixels
    y_ref : (1, 4*Cout, TS)   bf16  conv output (phase-channel rows, pixel lanes)
    s_ref : (1, 1, 4*Cout, 2) f32   per-step [sum, sum-of-squares] partials
    """
    # One MXU GEMM produces all 4 output phases; f32 accumulation.
    acc = jnp.dot(w_ref[...], p_ref[0], preferred_element_type=jnp.float32)
    # Lane-dense bf16 store of the intermediate.
    y_ref[0] = acc.astype(y_ref.dtype)
    # BatchNorm partial statistics from the f32 accumulator (exact per step).
    ssum = jnp.sum(acc, axis=1, keepdims=True)            # (4*Cout, 1)
    ssq = jnp.sum(acc * acc, axis=1, keepdims=True)       # (4*Cout, 1)
    s_ref[0, 0] = jnp.concatenate([ssum, ssq], axis=1)    # (4*Cout, 2)


def bn_lrelu_kernel(y_ref, scale_ref, shift_ref, o_ref, *, slope):
    """Streaming BN FMA + LeakyReLU. bf16 in, f32 math, f32 out."""
    z = y_ref[0].astype(jnp.float32) * scale_ref[0] + shift_ref[0]
    o_ref[0] = jnp.where(z > 0, z, slope * z)


# ------------------------------- wrapper -----------------------------------

def _spatial_tile(hw, max_tile):
    """Largest legal lane tile: full extent if small, else a 128-multiple divisor."""
    if hw <= max_tile:
        return hw
    for ts in range(max_tile - max_tile % 128, 127, -128):
        if hw % ts == 0:
            return ts
    return hw


def conv2d_transpose_block(x_nchw, weight, bias, gamma, beta,
                           stride=2, padding=2, output_padding=1,
                           eps=1e-5, slope=0.1):
    # `bias` is intentionally unused: a per-channel bias applied immediately
    # before BatchNorm cancels exactly (the mean absorbs it, variance unchanged).
    N, Cin, H, W = x_nchw.shape
    Cin_w, Cout, kH, kW = weight.shape
    assert Cin == Cin_w
    assert (kH, kW, stride, padding, output_padding) == (5, 5, 2, 2, 1), \
        "kernel specialized to ConvTranspose2d(k=5, s=2, p=2, output_padding=1)"
    Hout, Wout = 2 * H, 2 * W
    HW = H * W
    C4 = 4 * Cout
    K9 = 9 * Cin

    # ---- sub-pixel weights: rows (ph, pw, co), cols (th, tw, ci) ------------
    # Output pixel (2a+ph, 2b+pw) uses original tap (kh, kw) = (ph+4-2*th,
    # pw+4-2*tw) applied to halo-padded input position (a+th, b+tw).
    w_sub = jnp.zeros((3, 3, Cin, 2, 2, Cout), jnp.float32)
    for th in range(3):
        for tw in range(3):
            for ph in range(2):
                for pw in range(2):
                    kh = ph + 4 - 2 * th
                    kw = pw + 4 - 2 * tw
                    if 0 <= kh < 5 and 0 <= kw < 5:
                        w_sub = w_sub.at[th, tw, :, ph, pw, :].set(weight[:, :, kh, kw])
    w_gemm = jnp.transpose(w_sub, (3, 4, 5, 0, 1, 2)).reshape(C4, K9).astype(jnp.bfloat16)

    # ---- wrapper-side tap stacking (bf16): rows=(th,tw,ci), lanes=(a,b) -----
    x_pad = jnp.pad(x_nchw.astype(jnp.bfloat16), ((0, 0), (0, 0), (1, 1), (1, 1)))
    taps = [x_pad[:, :, th:th + H, tw:tw + W] for th in range(3) for tw in range(3)]
    patches = jnp.stack(taps, axis=1).reshape(N, K9, HW)       # (N, 9*Cin, H*W)

    # ---- pass 1: lane-dense transposed GEMM + BN partial stats --------------
    TS1 = _spatial_tile(HW, 2048)
    S1 = HW // TS1
    conv_out, stats_part = pl.pallas_call(
        convt_gemm_kernel,
        out_shape=(jax.ShapeDtypeStruct((N, C4, HW), jnp.bfloat16),
                   jax.ShapeDtypeStruct((N, S1, C4, 2), jnp.float32)),
        grid=(N, S1),
        in_specs=[pl.BlockSpec((C4, K9), lambda n, s: (0, 0)),
                  pl.BlockSpec((1, K9, TS1), lambda n, s: (n, 0, s))],
        out_specs=(pl.BlockSpec((1, C4, TS1), lambda n, s: (n, 0, s)),
                   pl.BlockSpec((1, 1, C4, 2), lambda n, s: (n, s, 0, 0))),
        compiler_params=pltpu.CompilerParams(
            dimension_semantics=("parallel", "parallel")),
    )(w_gemm, patches)

    # ---- tiny per-channel math: fold BN into one scale/shift FMA ------------
    stats = stats_part.sum(axis=(0, 1))                         # (4*Cout, 2)
    sum_c = stats[:, 0].reshape(4, Cout).sum(axis=0)            # (Cout,)
    sq_c = stats[:, 1].reshape(4, Cout).sum(axis=0)
    count = float(N * Hout * Wout)
    mean = sum_c / count
    var = jnp.maximum(sq_c / count - mean * mean, 0.0)          # biased var (BN training)
    scale = gamma.astype(jnp.float32) * jax.lax.rsqrt(var + eps)
    shift = beta.astype(jnp.float32) - mean * scale
    scale_rows = jnp.tile(scale, 4).reshape(1, C4, 1)           # rows = (ph, pw, co)
    shift_rows = jnp.tile(shift, 4).reshape(1, C4, 1)

    # ---- pass 2: streaming BN FMA + LeakyReLU (lane-dense blocks) -----------
    TS2 = _spatial_tile(HW, 4096)
    S2 = HW // TS2
    out_pc = pl.pallas_call(
        functools.partial(bn_lrelu_kernel, slope=slope),
        out_shape=jax.ShapeDtypeStruct((N, C4, HW), jnp.float32),
        grid=(N, S2),
        in_specs=[pl.BlockSpec((1, C4, TS2), lambda n, s: (n, 0, s)),
                  pl.BlockSpec((1, C4, 1), lambda n, s: (0, 0, 0)),
                  pl.BlockSpec((1, C4, 1), lambda n, s: (0, 0, 0))],
        out_specs=pl.BlockSpec((1, C4, TS2), lambda n, s: (n, 0, s)),
        compiler_params=pltpu.CompilerParams(
            dimension_semantics=("parallel", "parallel")),
    )(conv_out, scale_rows, shift_rows)

    # ---- phase de-interleave -> NCHW (layout plumbing) ----------------------
    # TODO(synk): fold this 2x2 pixel-shuffle into pass-2's output BlockSpec
    # (or return NHWC if the consumer allows) to avoid the extra XLA transpose.
    y = out_pc.reshape(N, 2, 2, Cout, H, W)            # (n, ph, pw, co, a, b)
    y = jnp.transpose(y, (0, 3, 4, 1, 5, 2))           # (n, co, a, ph, b, pw)
    return y.reshape(N, Cout, Hout, Wout)


# -------------------------- pure-JAX reference ------------------------------

def reference_forward(x_nchw, weight, bias, gamma, beta,
                      stride=2, padding=2, output_padding=1, eps=1e-5, slope=0.1):
    N, Cin, H, W = x_nchw.shape
    _, Cout, k, _ = weight.shape
    x = jnp.transpose(x_nchw, (0, 2, 3, 1)).astype(jnp.float32)
    rhs = jnp.transpose(weight[:, :, ::-1, ::-1], (2, 3, 0, 1))  # (k,k,Cin,Cout)
    pad_lo = k - 1 - padding
    pad_hi = k - 1 - padding + output_padding
    y = jax.lax.conv_general_dilated(
        x, rhs, window_strides=(1, 1),
        padding=[(pad_lo, pad_hi), (pad_lo, pad_hi)],
        lhs_dilation=(stride, stride),
        dimension_numbers=("NHWC", "HWIO", "NHWC"))
    y = y + bias.reshape(1, 1, 1, Cout)
    mean = jnp.mean(y, axis=(0, 1, 2), keepdims=True)
    var = jnp.var(y, axis=(0, 1, 2), keepdims=True)
    yn = (y - mean) * jax.lax.rsqrt(var + eps) * gamma.reshape(1, 1, 1, Cout) \
         + beta.reshape(1, 1, 1, Cout)
    yn = jnp.where(yn > 0, yn, slope * yn)
    return jnp.transpose(yn, (0, 3, 1, 2))


if __name__ == "__main__":
    key = jax.random.PRNGKey(0)
    k_x, k_w, k_b, k_g, k_be = jax.random.split(key, 5)

    N, Cin, H, W = 2, 4, 16, 16
    Cout, ksz = 8, 5

    x = jax.random.normal(k_x, (N, Cin, H, W), jnp.float32)
    bound = 1.0 / (Cin * ksz * ksz) ** 0.5
    weight = jax.random.uniform(k_w, (Cin, Cout, ksz, ksz), jnp.float32, -bound, bound)
    bias = jax.random.uniform(k_b, (Cout,), jnp.float32, -bound, bound)
    gamma = 1.0 + 0.1 * jax.random.normal(k_g, (Cout,), jnp.float32)
    beta = 0.1 * jax.random.normal(k_be, (Cout,), jnp.float32)

    out = conv2d_transpose_block(x, weight, bias, gamma, beta)
    out = jax.block_until_ready(out)

    ref = reference_forward(x, weight, bias, gamma, beta)
    assert out.shape == (N, Cout, 2 * H, 2 * W), out.shape
    max_err = float(jnp.max(jnp.abs(out - ref)))
    # bf16 MXU operands + bf16 conv intermediate vs. f32 reference.
    assert max_err < 5e-2, max_err
    print("KERNEL_OK")
</pallas_src>

<mosaic_0001>
module attributes {stable_mosaic.version = 11 : i64} {
  func.func @convt_gemm_kernel(%arg0: i32, %arg1: i32, %arg2: memref<32x36xbf16, #tpu.memory_space<vmem>>, %arg3: memref<1x36x256xbf16, #tpu.memory_space<vmem>>, %arg4: memref<1x32x256xbf16, #tpu.memory_space<vmem>>, %arg5: memref<1x1x32x2xf32, #tpu.memory_space<vmem>>) attributes {dimension_semantics = [#tpu.dimension_semantics<parallel>, #tpu.dimension_semantics<parallel>], iteration_bounds = array<i64: 2, 1>, scalar_prefetch = 0 : i64, scratch_operands = 0 : i64, tpu.core_type = #tpu.core_type<tc>, window_params = [{pipeline_mode = #tpu.pipeline_mode<synchronous>, transform_indices = @transform_0, window_bounds = array<i64: 32, 36>}, {transform_indices = @transform_1, window_bounds = array<i64: 1, 36, 256>}, {transform_indices = @transform_2, window_bounds = array<i64: 1, 32, 256>}, {transform_indices = @transform_3, window_bounds = array<i64: 1, 1, 32, 2>}]} {
    %c0 = arith.constant 0 : index
    %c0_0 = arith.constant 0 : index
    %0 = vector.load %arg2[%c0, %c0_0] : memref<32x36xbf16, #tpu.memory_space<vmem>>, vector<32x36xbf16>
    %c0_1 = arith.constant 0 : index
    %c0_2 = arith.constant 0 : index
    %c0_3 = arith.constant 0 : index
    %1 = vector.load %arg3[%c0_1, %c0_2, %c0_3] : memref<1x36x256xbf16, #tpu.memory_space<vmem>>, vector<1x36x256xbf16>
    %2 = vector.shape_cast %1 : vector<1x36x256xbf16> to vector<36x256xbf16>
    %cst = arith.constant dense<0.000000e+00> : vector<32x256xf32>
    %3 = tpu.matmul %0, %2, %cst {dimension_numbers = #tpu.dot_dimension_numbers<[1], [0], [0], [1], [0, 0, 1, 1], [], []>} : vector<32x36xbf16>, vector<36x256xbf16>, vector<32x256xf32> -> vector<32x256xf32>
    %4 = arith.truncf %3 : vector<32x256xf32> to vector<32x256xbf16>
    %c0_4 = arith.constant 0 : index
    %c0_5 = arith.constant 0 : index
    %c0_6 = arith.constant 0 : index
    %5 = vector.load %arg4[%c0_4, %c0_5, %c0_6] : memref<1x32x256xbf16, #tpu.memory_space<vmem>>, vector<1x32x256xbf16>
    %6 = vector.shape_cast %5 : vector<1x32x256xbf16> to vector<32x256xbf16>
    %7 = vector.shape_cast %4 : vector<32x256xbf16> to vector<1x32x256xbf16>
    tpu.vector_store %arg4[%c0_4, %c0_5, %c0_6], %7 {strides = array<i32>} : memref<1x32x256xbf16, #tpu.memory_space<vmem>>, vector<1x32x256xbf16>,
    %cst_7 = arith.constant dense<0.000000e+00> : vector<32xf32>
    %8 = vector.multi_reduction <add>, %3, %cst_7 [1] : vector<32x256xf32> to vector<32xf32>
    %9 = vector.shape_cast %8 : vector<32xf32> to vector<32x1xf32>
    %10 = arith.mulf %3, %3 : vector<32x256xf32>
    %cst_8 = arith.constant dense<0.000000e+00> : vector<32xf32>
    %11 = vector.multi_reduction <add>, %10, %cst_8 [1] : vector<32x256xf32> to vector<32xf32>
    %12 = vector.shape_cast %11 : vector<32xf32> to vector<32x1xf32>
    %13 = tpu.concatenate %9, %12 in 1 : vector<32x1xf32>, vector<32x1xf32> -> vector<32x2xf32>
    %c0_9 = arith.constant 0 : index
    %c0_10 = arith.constant 0 : index
    %c0_11 = arith.constant 0 : index
    %c0_12 = arith.constant 0 : index
    %14 = vector.load %arg5[%c0_9, %c0_10, %c0_11, %c0_12] : memref<1x1x32x2xf32, #tpu.memory_space<vmem>>, vector<1x1x32x2xf32>
    %15 = vector.shape_cast %14 : vector<1x1x32x2xf32> to vector<32x2xf32>
    %16 = vector.shape_cast %13 : vector<32x2xf32> to vector<1x1x32x2xf32>
    tpu.vector_store %arg5[%c0_9, %c0_10, %c0_11, %c0_12], %16 {strides = array<i32>} : memref<1x1x32x2xf32, #tpu.memory_space<vmem>>, vector<1x1x32x2xf32>,
    return
  }
  func.func @transform_0(%arg0: i32, %arg1: i32) -> (i32, i32) {
    %c0_i32 = arith.constant 0 : i32
    %c0_i32_0 = arith.constant 0 : i32
    %c0_i32_1 = arith.constant 0 : i32
    return %c0_i32, %c0_i32_0 : i32, i32
  }
  func.func @transform_1(%arg0: i32, %arg1: i32) -> (i32, i32, i32) {
    %c0_i32 = arith.constant 0 : i32
    %c0_i32_0 = arith.constant 0 : i32
    return %arg0, %c0_i32, %arg1 : i32, i32, i32
  }
  func.func @transform_2(%arg0: i32, %arg1: i32) -> (i32, i32, i32) {
    %c0_i32 = arith.constant 0 : i32
    %c0_i32_0 = arith.constant 0 : i32
    return %arg0, %c0_i32, %arg1 : i32, i32, i32
  }
  func.func @transform_3(%arg0: i32, %arg1: i32) -> (i32, i32, i32, i32) {
    %c0_i32 = arith.constant 0 : i32
    %c0_i32_0 = arith.constant 0 : i32
    %c0_i32_1 = arith.constant 0 : i32
    return %arg0, %arg1, %c0_i32, %c0_i32_0 : i32, i32, i32, i32
  }
}

</mosaic_0001>

<bundles_post_ra>
// kernel: tpu_custom_call.1
= control target key start
LH: loop header
LB: loop body
LE: loop exit
PB: predicated region body
PF: predicated region fallthrough
CT: control target
= control target key end

     0   :  { %9 = vsyncpa [#allocation3], 0  ;;  %s899_s0 = inlined_call_operand.vmem [shape: bf16[32,36], index: 0, kind: input, shape index: {}]   ;;  %s900_s1 = inlined_call_operand.vmem [shape: bf16[2,36,256], index: 1, kind: input, shape index: {}]   ;;  %s901_s2 = inlined_call_operand.hbm [shape: bf16[2,32,256], index: 2, kind: output, shape index: {0}]   ;;  %s902_s3 = inlined_call_operand.vmem [shape: f32[2,1,32,2], index: 3, kind: output, shape index: {1}]  }
   0x1   :  { %11 = vsyncpa [#allocation3 + $0x1], 0  ;;  %s767_s12 = smov 0   ;;  %s769_s13 = smov 0  }
   0x2   :  { %s771_s14 = smov 0   ;;  %s773_s15 = smov 0  }
   0x3   :  { %s775_s16 = smov 0   ;;  %s777_s17 = smov 0  }
   0x4 LB: > { %s553_s18 = sadd.s32 4294967295, %s741_s17   ;;  %s554_s19 = sadd.s32 4294967294, %s741_s17   ;;  %s741_s17 = sphi %s777_s17, %s17_s17   ;;  %s737_s16 = sphi %s775_s16, %s909_s16   ;;  %s733_s15 = sphi %s773_s15, %s908_s15   ;;  %s729_s14 = sphi %s771_s14, %s907_s14   ;;  %s725_s13 = sphi %s769_s13, %s906_s13   ;;  %s721_s12 = sphi %s767_s12, %s905_s12  }
   0x5   : > { %s29_s20 = sadd.s32 1, %s737_s16  ;;  %s87_s21 = sadd.s32 1, %s729_s14 }
   0x6   : > { %p31_p0 = scmp.ge.s32.totalorder %s29_s20, 2  ;;  %p97_p1 = scmp.ne.s32.totalorder %s729_s14, %s725_s13 }
   0x7   : > { %p98_p2 = scmp.eq.s32.totalorder %s553_s18, 1  ;;  %p103_p3 = scmp.ne.s32.totalorder %s725_s13, %s721_s12 }
   0x8   : > { %s911_s20 = smov (%p31_p0, %s29_s20), 0  ;;  %p104_p5 = scmp.eq.s32.totalorder %s554_s19, 1 }
   0x9   : > { %p807_p4 = por %p98_p2, %p97_p1  ;;  %s82_s23 = ssub.s32 %s737_s16, %s911_s20 }
   0xa   : > { %p557_p6 = scmp.ge.s32.totalorder %s741_s17, 1  ;;  %p85_p7 = scmp.eq.s32.totalorder %s82_s23, 0 }
   0xb   : > { %p814_p8 = por %p104_p5, %p103_p3  ;;  %p166_p9 = scmp.lt.s32.totalorder %s741_s17, 3 }
   0xc   : > { %s820_s25 = scalar_select %p85_p7, %s729_s14, %s87_s21  }
   0xd   : > { %p167_p10 = pnand %p557_p6, %p166_p9 }
   0xe   : > { %p204_p11 = scmp.lt.s32.totalorder (!%p167_p10), %s733_s15, 1  ;;  %v743_v0 = vmov (!%p167_p10), 0   ;;  %vm275_vm0 = vcmask (!%p167_p10), 1041408   ;;  %v661_v9 = vld [vmem:[%s899_s0] sm:$0xff] (!%p167_p10)   ;;  %v662_v10 = vld [vmem:[%s899_s0 + $0x8] sm:$0xff] (!%p167_p10)   ;;  %vm268_vm1 = vcmask (!%p167_p10), 293888  }
   0xf   : > { %170 = sbr.rel (%p167_p10) target bundleno = 412 (0x19c), region = 28  ;;  %314 = vmatprep.mubr.bf16.mxu0 (!%p167_p10), %v743_v0  ;;  %324 = vmatprep.mubr.bf16.mxu1 (!%p167_p10), %v743_v0  ;;  %s189_s8 = sand.u32 (!%p167_p10), 1, %s725_s13  }
  0x10   : > { %s558_s9 = sshll.u32 (!%p167_p10), %s189_s8, 5  ;;  %s587_s18 = sshll.u32 (!%p167_p10), %s733_s15, 9 }
  0x11   : > { %s191_s10 = scalar_lea.vmem (!%p167_p10), [#allocation2], %s558_s9  ;;  %s845_s23 = scalar_lea.hbm (!%p167_p10), %s901_s2, %s587_s18 }
  0x12   : > { %s430_s11 = sshll.u32 (!%p167_p10), %s191_s10, 4  ;;  %s744_s29 = smov (!%p167_p10), [#allocation2]   ;;  %s839_s11 = int_to_ptr.vmem [resolvable:$true] %s430_s11 }
  0x13   : > { %s663_s28 = scalar_lea.vmem (!%p167_p10), %s839_s11, 512 }
  0x14   : > { %p664_p12 = scmp.ne.s32.totalorder (!%p167_p10), %s839_s11, %s663_s28 }
  0x16   : > { %s824_s26 = scalar_select %p204_p11, %s733_s15, 1 }
  0x17   : > { %p665_p13 = pnand %p664_p12, %p807_p4 }
  0x18   : > { %s594_s27 = smul.u32 40, %s824_s26 }
  0x19   : > { %p666_p0 = pneg %p665_p13 }
  0x1a   : > { %s211_s30 = scalar_lea.vmem %s900_s1, %s594_s27  ;;  %s849_s27 = scalar_lea.sflag [#allocation3], %s189_s8 }
  0x1b   : > { %v653_v1 = vld [vmem:[%s211_s30 + $0x4] ss:$8 sps:$4 sm:$0xff]   ;;  %v655_v2 = vld [vmem:[%s211_s30] ss:$8 sps:$4 sm:$0xff]   ;;  %v656_v3 = vld [vmem:[%s211_s30 + $0x14] ss:$8 sps:$4 sm:$0xff]  }
  0x1c   : > { %282 = vmatprep.subr.bf16.mxu0 %v653_v1  ;;  %588 = vmatprep.subr.bf16.mxu1 %v653_v1  ;;  %v232_v4 = vld [vmem:[%s211_s30 + $0x20] sm:$0x33]  ;;  %v658_v5 = vld [vmem:[%s211_s30 + $0x10] ss:$8 sps:$4 sm:$0xff]   ;;  %s667_s30 = sshll.u32 %s744_s29, 4  ;;  %s668_s30 = int_to_ptr.vmem [resolvable:$false] %s667_s30 }
  0x1d   : > { %283 = vmatpush1.bf16.msra.mxu0 %v655_v2  ;;  %591 = vmatpush1.bf16.msra.mxu1 %v655_v2  ;;  %v569_v6 = vcombine.high %v232_v4, %v232_v4  ;;  %v568_v7 = vcombine.low %v232_v4, %v232_v4  ;;  %s669_s4 = scalar_lea.vmem %s668_s30, 1024  ;;  %p670_p1 = scmp.lt.s32.totalorder %s839_s11, %s668_s30 }
  0x1e   : > { %284 = vmatprep.subr.bf16.mxu0 %v656_v3  ;;  %589 = vmatprep.subr.bf16.mxu1 %v656_v3  ;;  %p671_p2 = scmp.lt.s32.totalorder %s669_s4, %s663_s28 }
  0x1f   : > { %v277_v8 = vsel %vm275_vm0, %v568_v7, 0 }
  0x20   : > { %p672_p3 = por %p671_p2, %p670_p1 }
  0x21   : > { %285 = vmatpush1.bf16.msra.mxu0 %v658_v5  ;;  %592 = vmatpush1.bf16.msra.mxu1 %v658_v5 }
  0x22   : > { %570 = vmatprep.subr.msk.bf16.mxu0 %vm275_vm0, %v569_v6  ;;  %590 = vmatprep.subr.msk.bf16.mxu1 %vm275_vm0, %v569_v6  ;;  %p673_p5 = pnand %p672_p3, %p666_p0 }
  0x25   : > { %287 = vmatpush1.bf16.msra.mxu0 %v277_v8  ;;  %593 = vmatpush1.bf16.msra.mxu1 %v277_v8 }
  0x28   : > { %571 = vmatmul.mubr.msk.bf16.vlgmr.msra.gmra.mrb[0].mxu0 %vm268_vm1, %v661_v9  ;;  %572 = vmatmul.mubr.msk.bf16.vlgmr.msra.gmra.mrb[0].mxu1 %vm268_vm1, %v662_v10 }
  0xfb   : > { %v316_v11 = vpop.f32.mrb[0].mxu0  ;;  %v326_v12 = vpop.f32.mrb[0].mxu1 }
  0xfc   : > { %v318_v13 = vpop.f32.mrb[1].mxu0  ;;  %v328_v14 = vpop.f32.mrb[1].mxu1  ;;  %v375_v15 = vmul.f32 %v316_v11, %v316_v11  ;;  %v379_v16 = vmul.f32 %v326_v12, %v326_v12 }
  0xfd   : > { %v583_v17 = vpack.c.bf16 %v318_v13, %v316_v11  ;;  %v585_v18 = vpack.c.bf16 %v328_v14, %v326_v12  ;;  %v320_v19 = vpop.f32.mrb[2].mxu0  ;;  %v330_v20 = vpop.f32.mrb[2].mxu1  ;;  %v369_v21 = vadd.f32 %v328_v14, %v326_v12  ;;  %v363_v22 = vadd.f32 %v318_v13, %v316_v11 }
  0xfe   : > { %v322_v23 = vpop.f32.mrb[3].mxu0  ;;  %v332_v24 = vpop.f32.mrb[3].mxu1  ;;  %v377_v25 = vmul.f32 %v320_v19, %v320_v19  ;;  %v376_v26 = vmul.f32 %v318_v13, %v318_v13  ;;  %v381_v27 = vmul.f32 %v330_v20, %v330_v20  ;;  %v380_v28 = vmul.f32 %v328_v14, %v328_v14 }
  0xff   : > { %359 = vst [vmem:[%s191_s10] sm:$0xff] %v583_v17  ;;  %361 = vst [vmem:[%s191_s10 + $0x10] sm:$0xff] %v585_v18  ;;  %v584_v29 = vpack.c.bf16 %v322_v23, %v320_v19  ;;  %v378_v30 = vmul.f32 %v322_v23, %v322_v23  ;;  %v586_v31 = vpack.c.bf16 %v332_v24, %v330_v20  ;;  %370 = vadd.xlane.f32.xlu1 %v369_v21 }
 0x100   : > { %v382_v32 = vmul.f32 %v332_v24, %v332_v24  ;;  %364 = vadd.xlane.f32.xlu0 %v363_v22  ;;  %v372_v33 = vadd.f32 %v332_v24, %v330_v20  ;;  %v366_v34 = vadd.f32 %v322_v23, %v320_v19  ;;  %v383_v35 = vadd.f32 %v376_v26, %v375_v15 }
 0x101   : > { %v389_v36 = vadd.f32 %v380_v28, %v379_v16  ;;  %360 = vst [vmem:[%s191_s10 + $0x8] sm:$0xff] %v584_v29  ;;  %362 = vst [vmem:[%s191_s10 + $0x18] sm:$0xff] %v586_v31  ;;  %v386_v37 = vadd.f32 %v378_v30, %v377_v25 }
 0x102   : > { %v392_v38 = vadd.f32 %v382_v32, %v381_v27 }
 0x103   : > { %373 = vadd.xlane.f32.xlu1 %v372_v33 }
 0x104   : > { %367 = vadd.xlane.f32.xlu0 %v366_v34 }
 0x107   : > { %387 = vadd.xlane.f32.xlu1 %v386_v37 }
 0x108   : > { %384 = vadd.xlane.f32.xlu0 %v383_v35 }
 0x10b   : > { %393 = vadd.xlane.f32.xlu1 %v392_v38 }
 0x10c   : > { %390 = vadd.xlane.f32.xlu0 %v389_v36 }
 0x10d   : > { %676 = shalt.err (!%p673_p5)
}
 0x10e   : > { %s677_s15 = scalar_lea.hbm %s845_s23, 512  ;;  %s681_s7 = scalar_lea.hbm %s901_s2, 1024 }
 0x10f   : > { %p678_p6 = scmp.ne.s32.totalorder %s845_s23, %s677_s15  ;;  %p682_p10 = scmp.lt.u32.totalorder %s845_s23, %s901_s2 }
 0x110   : > { %p683_p11 = scmp.lt.u32.totalorder %s681_s7, %s677_s15  ;;  %p685_p13 = scmp.lt.u32.totalorder %s677_s15, %s845_s23 }
 0x111   : > { %p679_p7 = pnand %p678_p6, %p807_p4 }
 0x112   : > { %p684_p12 = por %p683_p11, %p682_p10 }
 0x113   : > { %p680_p9 = pneg %p679_p7 }
 0x114   : > { %p686_p0 = por %p685_p13, %p684_p12 }
 0x116   : > { %p687_p1 = pnand %p686_p0, %p680_p9 }
 0x118   : > { %690 = shalt.err (!%p687_p1)
}
 0x119   : > { %s745_s10 = smov 128   ;;  %s746_s18 = smov 8   ;;  %vm395_vm2 = vcmask 7168   ;;  %vm400_vm3 = vcmask 15360  }
 0x11a   : > { %595 = dma.vmem_to_hbm [thread:$0]  (%p807_p4), %s839_s11, 512, %s845_s23, %s849_s27, %s745_s10, %s745_s10, %s746_s18  }
 0x11b   : > { %s582_s19 = sshll.u32 %s824_s26, 5 }
 0x11c   : > { %s222_s29 = scalar_lea.vmem %s902_s3, %s582_s19 }
 0x18c   : > { %v371_v39 = vpop.xlane.xlu1 %370 }
 0x18d   : > { %v365_v40 = vpop.xlane.xlu0 %364 }
 0x190   : > { %v374_v41 = vpop.xlane.xlu1 %373 }
 0x191   : > { %v368_v42 = vpop.xlane.xlu0 %367 }
 0x194   : > { %v388_v43 = vpop.xlane.xlu1 %387 }
 0x195   : > { %v397_v44 = vsel %vm395_vm2, %v368_v42, %v388_v43  ;;  %v385_v45 = vpop.xlane.xlu0 %384 }
 0x196   : > { %402 = vst.msk [vmem:[%s222_s29 + $0x8] sm:$0xff] %vm400_vm3, %v397_v44  ;;  %v396_v46 = vsel %vm395_vm2, %v365_v40, %v385_v45 }
 0x197   : > { %401 = vst.msk [vmem:[%s222_s29] sm:$0xff] %vm400_vm3, %v396_v46 }
 0x198   : > { %v394_v47 = vpop.xlane.xlu1 %393 }
 0x199   : > { %v399_v48 = vsel %vm395_vm2, %v374_v41, %v394_v47  ;;  %v391_v49 = vpop.xlane.xlu0 %390 }
 0x19a   : > { %404 = vst.msk [vmem:[%s222_s29 + $0x18] sm:$0xff] %vm400_vm3, %v399_v48  ;;  %v398_v50 = vsel %vm395_vm2, %v371_v39, %v391_v49 }
 0x19b   : > { %403 = vst.msk [vmem:[%s222_s29 + $0x10] sm:$0xff] %vm400_vm3, %v398_v50 }
 0x19c PF: > { %p601_p4 = scmp.ge.s32.totalorder %s741_s17, 2  ;;  %s448_s22 = sand.u32 1, %s721_s12  }
 0x19d   : > { %s449_s26 = scalar_lea.sflag [#allocation3], %s448_s22 }
 0x19e   : > { %p598_p2 = pnand %p601_p4, %p814_p8 }
 0x1a0   : > { %716 = dma.done.wait (!%p598_p2), %s449_s26, 512  }
 0x1a1   : > { %718 = vsyncadd (!%p598_p2), %s449_s26, 4294966784  ;;  %s17_s17 = sadd.s32 1, %s741_s17   ;;  %s905_s12 = smov %s725_s13 }
 0x1a2   : > { %p14_p3 = scmp.ge.s32.totalorder %s17_s17, 4   ;;  %s906_s13 = smov %s729_s14 }
 0x1a3   : > { %s907_s14 = smov %s820_s25  ;;  %s908_s15 = smov %s737_s16 }
 0x1a4   : > { %s909_s16 = smov %s911_s20  ;;  %16 = sbr.rel (!%p14_p3) target bundleno = 4 (0x4), region = 75 }
 0x1ab   :  { %466 = vsyncpa [#allocation3], 1 }
 0x1ac   :  { %468 = vsyncpa [#allocation3 + $0x1], 1 }

</bundles_post_ra>
